<compile_context>
chip_gen: v6e
topology: v6e:2x2x1
jax: 0.10.0
libtpu: 0.0.40
codegen_flags: <defaults>
</compile_context>

<pallas_src>
import functools

import jax
import jax.numpy as jnp
from jax.experimental import pallas as pl
from jax.experimental.pallas import tpu as pltpu


def weather_2nn_kernel(x_ref, w1_ref, b1_ref, w2_ref, b2_ref, o_ref):
    # x_ref: (13, TB)  batch-on-lanes tile (f32 in VMEM).
    x = x_ref[...]
    # Layer 1 on the MXU: single-pass bf16 operands, f32 accumulation.
    # (bf16 MXU is native on v5e/v6e/v7x; avoids 3-6x multi-pass f32 matmul.)
    h = jnp.dot(
        w1_ref[...].astype(jnp.bfloat16),
        x.astype(jnp.bfloat16),
        preferred_element_type=jnp.float32,
    )                                                       # (16, TB)
    h = jax.nn.sigmoid(h + b1_ref[...])                     # f32 EUP path (v5e-safe)
    # Layer 2 as broadcast-multiply + sublane reduce (VPU/XLU; MXU not needed, N=1).
    y = jnp.sum(h * w2_ref[...], axis=0, keepdims=True) + b2_ref[...]   # (1, TB)
    o_ref[...] = y.astype(o_ref.dtype)


def _round_up(n, m):
    return ((n + m - 1) // m) * m


@functools.partial(jax.jit, static_argnames=("tb_max", "min_grid_steps"))
def weather_2nn(x, w1, b1, w2, b2, *, tb_max=32768, min_grid_steps=8):
    """x: (B, 13) float32 -> (B, 1) float32.

    w1: (16, 13), b1: (16, 1), w2: (16, 1), b2: (1, 1)  (PyTorch (out,in) layout;
    fc2 weight stored as a column).
    """
    B = x.shape[0]
    # Lane-dense batch tile: multiple of 128.
    #   VMEM: x tile (13,tb) f32 occupies 16 sublane rows -> 2 MiB at tb=32768 per
    #   buffer; out tile (1,tb) pads to 8 sublanes -> 1 MiB per buffer.  Double
    #   buffered total ~6 MiB at tb=32768: fits every generation's default scoped
    #   VMEM (v5e 16 MiB, v6e/v7x 32 MiB).
    # min_grid_steps keeps the grid deep enough that the "parallel" batch axis is
    # actually split across both TensorCores on v7x and the DMA pipeline has depth.
    tb = min(tb_max, max(128, _round_up(pl.cdiv(B, min_grid_steps), 128)))
    grid = pl.cdiv(B, tb)

    # Batch-on-lanes layout.  This transpose is the one remaining extra HBM pass
    # over x; keep x feature-major (13, B) upstream to eliminate it.
    # TODO(synk): accept feature-major input directly to drop the relayout.
    x_t = x.T                                                # (13, B)
    # No host-side pad: the ragged final block is handled by Pallas (padded read,
    # masked write); garbage tail lanes never contaminate valid lanes because the
    # only reduction is over sublanes (axis 0).

    out_t = pl.pallas_call(
        weather_2nn_kernel,
        out_shape=jax.ShapeDtypeStruct((1, B), jnp.float32),
        grid_spec=pl.GridSpec(
            grid=(grid,),
            in_specs=[
                pl.BlockSpec((13, tb), lambda i: (0, i)),    # x tile, streamed
                pl.BlockSpec((16, 13), lambda i: (0, 0)),    # w1, VMEM-resident
                pl.BlockSpec((16, 1), lambda i: (0, 0)),     # b1
                pl.BlockSpec((16, 1), lambda i: (0, 0)),     # w2 (column)
                pl.BlockSpec((1, 1), lambda i: (0, 0)),      # b2
            ],
            out_specs=pl.BlockSpec((1, tb), lambda i: (0, i)),  # lane-dense output
        ),
        compiler_params=pltpu.CompilerParams(
            # Batch axis is embarrassingly parallel -> shards across both TCs on
            # v7x; no-op on v5e/v6e.
            dimension_semantics=("parallel",),
        ),
        cost_estimate=pl.CostEstimate(
            flops=2 * B * (13 * 16 + 16),
            transcendentals=B * 16,
            bytes_accessed=(13 + 1) * 4 * B + (16 * 13 + 16 + 16 + 1) * 4,
        ),
    )(x_t, w1, b1, w2, b2)

    return out_t.reshape(B, 1)


def init_params(key):
    """Deterministic init mirroring nn.Linear default: U(-1/sqrt(fan_in), 1/sqrt(fan_in))."""
    k1, k2, k3, k4 = jax.random.split(key, 4)
    bound1 = 1.0 / jnp.sqrt(13.0)
    bound2 = 1.0 / jnp.sqrt(16.0)
    w1 = jax.random.uniform(k1, (16, 13), jnp.float32, -bound1, bound1)  # (out, in)
    b1 = jax.random.uniform(k2, (16, 1), jnp.float32, -bound1, bound1)
    w2 = jax.random.uniform(k3, (16, 1), jnp.float32, -bound2, bound2)   # fc2 weight as column
    b2 = jax.random.uniform(k4, (1, 1), jnp.float32, -bound2, bound2)
    return w1, b1, w2, b2


def reference(x, w1, b1, w2, b2):
    h = jax.nn.sigmoid(x @ w1.T + b1.T)   # (B, 16)
    return h @ w2 + b2.T                  # (B, 1)


if __name__ == "__main__":
    key = jax.random.PRNGKey(0)
    kx, kx2, kp = jax.random.split(key, 3)
    w1, b1, w2, b2 = init_params(kp)

    # Small batch (single, partial block).
    B = 8
    x = jax.random.normal(kx, (B, 13), jnp.float32)
    out = jax.block_until_ready(weather_2nn(x, w1, b1, w2, b2))
    ref = reference(x, w1, b1, w2, b2)
    assert out.shape == (B, 1), out.shape
    # bf16 MXU operands (f32 accumulate) vs f32 reference -> relaxed tolerance.
    assert jnp.allclose(out, ref, atol=1e-2, rtol=1e-2), (out, ref)

    # Multi-block batch with a ragged final tile (exercises padded read / masked write).
    B2 = 300
    x2 = jax.random.normal(kx2, (B2, 13), jnp.float32)
    out2 = jax.block_until_ready(weather_2nn(x2, w1, b1, w2, b2))
    ref2 = reference(x2, w1, b1, w2, b2)
    assert out2.shape == (B2, 1), out2.shape
    assert jnp.allclose(out2, ref2, atol=1e-2, rtol=1e-2)

    print("KERNEL_OK")
</pallas_src>

<mosaic_0001>
module attributes {stable_mosaic.version = 11 : i64} {
  func.func @weather_2nn_kernel(%arg0: i32, %arg1: memref<13x128xf32, #tpu.memory_space<vmem>>, %arg2: memref<16x13xf32, #tpu.memory_space<vmem>>, %arg3: memref<16x1xf32, #tpu.memory_space<vmem>>, %arg4: memref<16x1xf32, #tpu.memory_space<vmem>>, %arg5: memref<1x1xf32, #tpu.memory_space<vmem>>, %arg6: memref<1x128xf32, #tpu.memory_space<vmem>>) attributes {dimension_semantics = [#tpu.dimension_semantics<parallel>], iteration_bounds = array<i64: 1>, scalar_prefetch = 0 : i64, scratch_operands = 0 : i64, tpu.core_type = #tpu.core_type<tc>, window_params = [{transform_indices = @transform_0, window_bounds = array<i64: 13, 128>}, {pipeline_mode = #tpu.pipeline_mode<synchronous>, transform_indices = @transform_1, window_bounds = array<i64: 16, 13>}, {pipeline_mode = #tpu.pipeline_mode<synchronous>, transform_indices = @transform_2, window_bounds = array<i64: 16, 1>}, {pipeline_mode = #tpu.pipeline_mode<synchronous>, transform_indices = @transform_3, window_bounds = array<i64: 16, 1>}, {pipeline_mode = #tpu.pipeline_mode<synchronous>, transform_indices = @transform_4, window_bounds = array<i64: 1, 1>}, {transform_indices = @transform_5, window_bounds = array<i64: 1, 128>}]} {
    %c0 = arith.constant 0 : index
    %c0_0 = arith.constant 0 : index
    %0 = vector.load %arg1[%c0, %c0_0] : memref<13x128xf32, #tpu.memory_space<vmem>>, vector<13x128xf32>
    %c0_1 = arith.constant 0 : index
    %c0_2 = arith.constant 0 : index
    %1 = vector.load %arg2[%c0_1, %c0_2] : memref<16x13xf32, #tpu.memory_space<vmem>>, vector<16x13xf32>
    %2 = arith.truncf %1 : vector<16x13xf32> to vector<16x13xbf16>
    %3 = arith.truncf %0 : vector<13x128xf32> to vector<13x128xbf16>
    %cst = arith.constant dense<0.000000e+00> : vector<16x128xf32>
    %4 = tpu.matmul %2, %3, %cst {dimension_numbers = #tpu.dot_dimension_numbers<[1], [0], [0], [1], [0, 0, 1, 1], [], []>} : vector<16x13xbf16>, vector<13x128xbf16>, vector<16x128xf32> -> vector<16x128xf32>
    %c0_3 = arith.constant 0 : index
    %c0_4 = arith.constant 0 : index
    %5 = vector.load %arg3[%c0_3, %c0_4] : memref<16x1xf32, #tpu.memory_space<vmem>>, vector<16x1xf32>
    %6 = vector.broadcast %5 : vector<16x1xf32> to vector<16x128xf32>
    %7 = arith.addf %4, %6 : vector<16x128xf32>
    %8 = arith.negf %7 : vector<16x128xf32>
    %9 = math.exp %8 : vector<16x128xf32>
    %cst_5 = arith.constant 1.000000e+00 : f32
    %10 = vector.broadcast %cst_5 : f32 to vector<16x128xf32>
    %11 = arith.addf %10, %9 : vector<16x128xf32>
    %12 = arith.divf %10, %11 : vector<16x128xf32>
    %c0_6 = arith.constant 0 : index
    %c0_7 = arith.constant 0 : index
    %13 = vector.load %arg4[%c0_6, %c0_7] : memref<16x1xf32, #tpu.memory_space<vmem>>, vector<16x1xf32>
    %14 = vector.broadcast %13 : vector<16x1xf32> to vector<16x128xf32>
    %15 = arith.mulf %12, %14 : vector<16x128xf32>
    %cst_8 = arith.constant dense<0.000000e+00> : vector<128xf32>
    %16 = vector.multi_reduction <add>, %15, %cst_8 [0] : vector<16x128xf32> to vector<128xf32>
    %17 = vector.shape_cast %16 : vector<128xf32> to vector<1x128xf32>
    %c0_9 = arith.constant 0 : index
    %c0_10 = arith.constant 0 : index
    %18 = vector.load %arg5[%c0_9, %c0_10] : memref<1x1xf32, #tpu.memory_space<vmem>>, vector<1x1xf32>
    %19 = vector.broadcast %18 : vector<1x1xf32> to vector<1x128xf32>
    %20 = arith.addf %17, %19 : vector<1x128xf32>
    %c0_11 = arith.constant 0 : index
    %c0_12 = arith.constant 0 : index
    %21 = vector.load %arg6[%c0_11, %c0_12] : memref<1x128xf32, #tpu.memory_space<vmem>>, vector<1x128xf32>
    tpu.vector_store %arg6[%c0_11, %c0_12], %20 {strides = array<i32>} : memref<1x128xf32, #tpu.memory_space<vmem>>, vector<1x128xf32>,
    return
  }
  func.func @transform_0(%arg0: i32) -> (i32, i32) {
    %c0_i32 = arith.constant 0 : i32
    %c0_i32_0 = arith.constant 0 : i32
    return %c0_i32, %arg0 : i32, i32
  }
  func.func @transform_1(%arg0: i32) -> (i32, i32) {
    %c0_i32 = arith.constant 0 : i32
    %c0_i32_0 = arith.constant 0 : i32
    %c0_i32_1 = arith.constant 0 : i32
    return %c0_i32, %c0_i32_0 : i32, i32
  }
  func.func @transform_2(%arg0: i32) -> (i32, i32) {
    %c0_i32 = arith.constant 0 : i32
    %c0_i32_0 = arith.constant 0 : i32
    %c0_i32_1 = arith.constant 0 : i32
    return %c0_i32, %c0_i32_0 : i32, i32
  }
  func.func @transform_3(%arg0: i32) -> (i32, i32) {
    %c0_i32 = arith.constant 0 : i32
    %c0_i32_0 = arith.constant 0 : i32
    %c0_i32_1 = arith.constant 0 : i32
    return %c0_i32, %c0_i32_0 : i32, i32
  }
  func.func @transform_4(%arg0: i32) -> (i32, i32) {
    %c0_i32 = arith.constant 0 : i32
    %c0_i32_0 = arith.constant 0 : i32
    %c0_i32_1 = arith.constant 0 : i32
    return %c0_i32, %c0_i32_0 : i32, i32
  }
  func.func @transform_5(%arg0: i32) -> (i32, i32) {
    %c0_i32 = arith.constant 0 : i32
    %c0_i32_0 = arith.constant 0 : i32
    return %c0_i32, %arg0 : i32, i32
  }
}

</mosaic_0001>

<bundles_post_ra>
// kernel: weather_2nn.1
= control target key start
LH: loop header
LB: loop body
LE: loop exit
PB: predicated region body
PF: predicated region fallthrough
CT: control target
= control target key end

     0   :  { %s266_s0 = inlined_call_operand.vmem [shape: f32[13,8], index: 0, kind: input, shape index: {}]   ;;  %s267_s1 = inlined_call_operand.vmem [shape: f32[16,13], index: 1, kind: input, shape index: {}]   ;;  %s268_s2 = inlined_call_operand.vmem [shape: f32[16,1], index: 2, kind: input, shape index: {}]   ;;  %s269_s3 = inlined_call_operand.vmem [shape: f32[16,1], index: 3, kind: input, shape index: {}]   ;;  %s270_s4 = inlined_call_operand.<no memory space> [shape: f32[1,1], index: 4, kind: input, shape index: {}]   ;;  %s271_s5 = inlined_call_operand.hbm [shape: f32[1,8], index: 5, kind: output, shape index: {}]  }
   0x1   :  { %v10_v0 = vstv %s270_s4 }
   0x2   :  { %11 = vst [vmem:[#allocation2] sm:$0x1] %v10_v0 }
   0x3   :  { %v24_v1 = vld [vmem:[%s266_s0] sm:$0xff]  ;;  %v25_v2 = vld [vmem:[%s266_s0 + $0x8] sm:$0x1f]  ;;  %vm46_vm0 = vcmask 1045504   ;;  %vm47_vm1 = vcmask 1046528   ;;  %v201_v3 = vmov 0.0  }
   0x4   :  { %158 = vmatprep.subr.bf16.mxu0 %v201_v3  ;;  %v29_v4 = vpack.c.bf16 %v25_v2, %v24_v1  ;;  %v30_v5 = vld [vmem:[%s268_s2] sm:$0xff]  ;;  %v202_v6 = vmov 65535   ;;  %vm203_vm2 = vmmov 0   ;;  %v27_v9 = vld [vmem:[%s267_s1 + $0x8] sm:$0xff]  ;;  %v204_v12 = vmov 0  }
   0x5   :  { %v48_v7 = vsel %vm46_vm0, 4294967295, %v202_v6  ;;  %160 = vmatprep.mubr.msk.bf16.mxu0 %vm203_vm2, %v201_v3  ;;  %v26_v8 = vld [vmem:[%s267_s1] sm:$0xff]  ;;  %169 = vset.pattern.permute.xlu0 %v204_v12 }
   0x6   :  { %v106_v10 = vld [vmem:[%s269_s3] sm:$0xff]  ;;  %v49_v11 = vsel %vm47_vm1, %v48_v7, 0  ;;  %170 = vset.pattern.permute.xlu1 %v204_v12 }
   0x7   :  { %12 = vsyncpa [#allocation4], 0  ;;  %v51_v13 = vand.u32 %v49_v11, %v29_v4  ;;  %34 = vperm.xlu0 %169, %v30_v5   ;;  %110 = vperm.xlu1 %170, %v106_v10   ;;  %v28_v14 = vpack.c.bf16 %v27_v9, %v26_v8  ;;  %v31_v15 = vld [vmem:[%s268_s2 + $0x8] sm:$0xff]  ;;  %vm42_vm3 = vcmask 105472   ;;  %v133_v38 = vlaneseq  ;;  %s205_s1 = smov [#allocation3]  }
   0x8   :  { %v107_v16 = vld [vmem:[%s269_s3 + $0x8] sm:$0xff]  ;;  %s145_s2 = sshll.u32 %s205_s1, 4  ;;  %s146_s2 = int_to_ptr.vmem [resolvable:$true] %s145_s2 }
   0x9   :  { %159 = vmatpush3.bf16.msra.mxu0 %v51_v13  ;;  %v127_v17 = vld [vmem:[#allocation2] sm:$0x1]  ;;  %v134_v41 = vshrl.u32 %v133_v38, 7  ;;  %s179_s3 = scalar_lea.vmem %s146_s2, 16  ;;  %s183_s9 = scalar_lea.vmem %s146_s2, 32 }
   0xa   :  { %p180_p0 = scmp.ne.s32.totalorder %s146_s2, %s179_s3  ;;  %p184_p1 = scmp.lt.s32.totalorder %s146_s2, %s146_s2 }
   0xb   :  { %39 = vperm.xlu0 %169, %v31_v15   ;;  %115 = vperm.xlu1 %170, %v107_v16   ;;  %v135_v44 = vsub.s32 0, %v134_v41  ;;  %p185_p2 = scmp.lt.s32.totalorder %s183_s9, %s179_s3 }
   0xc   :  { %161 = vmatmul.mubr.msk.bf16.vlgmr.msra.gmra.mxu0 %vm42_vm3, %v28_v14 }
   0xd   :  { %p186_p3 = por %p185_p2, %p184_p1 }
   0xf   :  { %130 = vperm.xlu0 %169, %v127_v17   ;;  %p187_p4 = pnand %p186_p3, %p180_p0 }
  0x82   :  { %v35_v18 = vpop.permute.xlu0 %34  ;;  %v111_v32 = vpop.permute.xlu1 %110 }
  0x86   :  { %v40_v23 = vpop.permute.xlu0 %39  ;;  %v116_v35 = vpop.permute.xlu1 %115 }
  0x8a   :  { %v131_v46 = vpop.permute.xlu0 %130 }
  0x8b   :  { %v136_v48 = vrot.slane %v131_v46, %v135_v44 }
  0xcc   :  { %v87_v19 = vpop.f32.mrf.mxu0 }
  0xcd   :  { %v88_v20 = vadd.f32 %v87_v19, %v35_v18 }
  0xce   :  { %v162_v21 = vpop.f32.mrf.mxu0 }
  0xcf   :  { %v154_v22 = vmul.f32 -1.442695, %v88_v20 }
  0xd0   :  { %v90_v24 = vpop.f32.mrf.mxu0 }
  0xd1   :  { %171 = vpow2.f32 %v154_v22  ;;  %v91_v25 = vadd.f32 %v90_v24, %v40_v23 }
  0xd2   :  { %v163_v26 = vpop.f32.mrf.mxu0 }
  0xd3   :  { %v155_v27 = vmul.f32 -1.442695, %v91_v25 }
  0xd5   :  { %173 = vpow2.f32 %v155_v27 }
  0xde   :  { %v172_v28 = vpop.eup %171 }
  0xdf   :  { %v100_v29 = vadd.f32 1.0, %v172_v28 }
  0xe1   :  { %175 = vrcp.f32 %v100_v29 }
  0xe2   :  { %v174_v30 = vpop.eup %173 }
  0xe3   :  { %v101_v31 = vadd.f32 1.0, %v174_v30 }
  0xe5   :  { %177 = vrcp.f32 %v101_v31 }
  0xee   :  { %v176_v33 = vpop.eup %175 }
  0xef   :  { %v118_v36 = vmul.f32 %v176_v33, %v111_v32 }
  0xf2   :  { %v178_v34 = vpop.eup %177 }
  0xf3   :  { %v119_v37 = vmul.f32 %v178_v34, %v116_v35 }
  0xf5   :  { %v120_v39 = vadd.f32 %v119_v37, %v118_v36 }
  0xf7   :  { %v121_v40 = vrot.slane %v120_v39, 4 }
  0xf9   :  { %v122_v42 = vadd.f32 %v121_v40, %v120_v39 }
  0xfb   :  { %v123_v43 = vrot.slane %v122_v42, 2 }
  0xfd   :  { %v124_v45 = vadd.f32 %v123_v43, %v122_v42 }
  0xff   :  { %v125_v47 = vrot.slane %v124_v45, 1 }
 0x101   :  { %v126_v49 = vadd.f32 %v125_v47, %v124_v45 }
 0x103   :  { %v137_v50 = vadd.f32 %v136_v48, %v126_v49 }
 0x105   :  { %138 = vst [vmem:[#allocation3] sm:$0x1] %v137_v50 }
 0x106   :  { %190 = shalt.err (!%p187_p4)
}
 0x107   :  { %148 = dma.vmem_to_hbm [thread:$0]  %s146_s2, 16, %s271_s5, [#allocation4]  }
 0x108   :  { %199 = dma.done.wait [#allocation4], 16  }
 0x109   :  { %200 = vsyncadd [#allocation4], 4294967280 }
 0x10a   :  { %152 = vsyncpa [#allocation4], 1 }

</bundles_post_ra>
